<compile_context>
chip_gen: v6e
topology: v6e:2x2x1
jax: 0.10.0
libtpu: 0.0.40
codegen_flags: <defaults>
</compile_context>

<pallas_src>
import jax
import jax.numpy as jnp
from jax.experimental import pallas as pl
from jax.experimental.pallas import tpu as pltpu

OBS_DIM = 16
HIDDEN = 32
ACT_DIM = 4
BATCH = 8

MAX_MU = 1.0
SIGMA_MIN = -5.0
SIGMA_MAX = 2.0

_BIAS_LEN = 2 * HIDDEN + 2 * ACT_DIM  # b1 | b2 | bmu | bsig  (column vector)

# Batch-tile cap (lanes per grid step).  ~10 MB of VMEM at 16384 in this layout,
# so it fits the scoped default on v5e (16 MiB), v6e/v7x (32 MiB).  On v6e you
# can raise this toward ~48K together with vmem_limit_bytes; on v7x keep the
# double-buffered footprint <= ~24-28 MiB (physical VMEM is 64 MiB there).
_DEFAULT_BLOCK_BATCH = 16384
_VMEM_LIMIT_BYTES = 32 * 1024 * 1024


def _round_up(x, m):
    return ((x + m - 1) // m) * m


def _choose_block_batch(batch, cap):
    """Lane-axis tile: multiple of 128, >=2 grid steps when batch > 128 (lets the
    "parallel" grid axis use both TensorCores on v7x), and sized relative to the
    batch so the final block is never nearly empty."""
    if batch <= 128:
        return 128
    n_steps = max(2, pl.cdiv(batch, cap))
    return min(cap, _round_up(pl.cdiv(batch, n_steps), 128))


def actor_prob_kernel(xT_ref, w1t_ref, w2t_ref, wht_ref, bias_ref, out_ref):
    # Feature-major: activations are (features, batch) with batch on the lane axis.
    xT = xT_ref[...]                                       # (OBS_DIM, bm)

    # Static, sublane-aligned views into the packed bias column (free).
    b1 = bias_ref[0:HIDDEN, :]                             # (HIDDEN, 1)
    b2 = bias_ref[HIDDEN:2 * HIDDEN, :]                    # (HIDDEN, 1)
    bh = bias_ref[2 * HIDDEN:2 * HIDDEN + 2 * ACT_DIM, :]  # (2*ACT_DIM, 1)

    # backbone: Linear -> ReLU -> Linear -> ReLU   (h = W^T x, lane-dense)
    h1 = jnp.maximum(
        jnp.dot(w1t_ref[...], xT, preferred_element_type=jnp.float32) + b1, 0.0)
    h2 = jnp.maximum(
        jnp.dot(w2t_ref[...], h1, preferred_element_type=jnp.float32) + b2, 0.0)

    # fused DiagGaussian head: one matmul produces rows [mu_lin | sig_lin]
    head = jnp.dot(wht_ref[...], h2,
                   preferred_element_type=jnp.float32) + bh  # (2*ACT_DIM, bm)

    # Apply both activations on the full (8, bm) vreg rows and select by sublane:
    # rows [0, ACT_DIM) -> mu, rows [ACT_DIM, 2*ACT_DIM) -> sigma.  The store is a
    # fully dense, unmasked (8 sublanes x 128 lanes) vst per 128 batch elements.
    mu_all = MAX_MU * jnp.tanh(head)
    sig_all = jnp.exp(jnp.clip(head, SIGMA_MIN, SIGMA_MAX))
    row = jax.lax.broadcasted_iota(jnp.int32, head.shape, 0)
    out_ref[...] = jnp.where(row < ACT_DIM, mu_all, sig_all).astype(out_ref.dtype)


def pack_params(params):
    """Repack the 8 small parameter arrays into 4 feature-major slabs."""
    (w1, b1, w2, b2, wmu, bmu, wsig, bsig) = params
    w1t = w1.T                                             # (HIDDEN, OBS_DIM)
    w2t = w2.T                                             # (HIDDEN, HIDDEN)
    wht = jnp.concatenate([wmu, wsig], axis=1).T           # (2*ACT_DIM, HIDDEN)
    bias_col = jnp.concatenate([b1, b2, bmu, bsig], axis=1).T  # (_BIAS_LEN, 1)
    return w1t, w2t, wht, bias_col


def actor_prob_forward(obs, params, block_batch=_DEFAULT_BLOCK_BATCH):
    """Returns (mu, sigma) of the Normal distribution produced by ActorProb."""
    obs = jnp.asarray(obs, jnp.float32)
    batch = obs.shape[0]

    w1t, w2t, wht, bias_col = pack_params(params)

    bm = _choose_block_batch(batch, block_batch)
    padded = _round_up(batch, bm)
    grid_m = padded // bm

    # Put batch on the lane axis.  (If the caller can supply obs feature-major
    # and consume feature-major outputs, this transpose and the ones below vanish.)
    obs_t = obs.T                                          # (OBS_DIM, batch)
    if padded != batch:
        obs_t = jnp.pad(obs_t, ((0, 0), (0, padded - batch)))

    n_param = (HIDDEN * OBS_DIM + HIDDEN * HIDDEN
               + 2 * ACT_DIM * HIDDEN + _BIAS_LEN)
    cost = pl.CostEstimate(
        flops=2 * padded * (OBS_DIM * HIDDEN + HIDDEN * HIDDEN
                            + HIDDEN * 2 * ACT_DIM),
        transcendentals=2 * padded * 2 * ACT_DIM,
        bytes_accessed=4 * (padded * (OBS_DIM + 2 * ACT_DIM) + n_param),
    )

    out = pl.pallas_call(
        actor_prob_kernel,
        out_shape=jax.ShapeDtypeStruct((2 * ACT_DIM, padded), jnp.float32),
        grid=(grid_m,),
        in_specs=[
            pl.BlockSpec((OBS_DIM, bm), lambda i: (0, i)),
            # Weights / bias: constant index_map -> fetched once, stay VMEM-resident.
            pl.BlockSpec((HIDDEN, OBS_DIM), lambda i: (0, 0)),
            pl.BlockSpec((HIDDEN, HIDDEN), lambda i: (0, 0)),
            pl.BlockSpec((2 * ACT_DIM, HIDDEN), lambda i: (0, 0)),
            pl.BlockSpec((_BIAS_LEN, 1), lambda i: (0, 0)),
        ],
        out_specs=pl.BlockSpec((2 * ACT_DIM, bm), lambda i: (0, i)),
        compiler_params=pltpu.CompilerParams(
            dimension_semantics=("parallel",),
            vmem_limit_bytes=_VMEM_LIMIT_BYTES),
        cost_estimate=cost,
    )(obs_t, w1t, w2t, wht, bias_col)

    # Contiguous row slices of the feature-major output (not strided column
    # slices), then transpose back to the module's (batch, act_dim) convention.
    mu = out[:ACT_DIM, :batch].T
    sigma = out[ACT_DIM:, :batch].T
    return mu, sigma


def init_params(key):
    """PyTorch-style Linear init: U(-1/sqrt(fan_in), 1/sqrt(fan_in)); weights stored
    as [in, out] (transposed relative to torch's [out, in])."""
    def linear(key, fan_in, fan_out):
        kw, kb = jax.random.split(key)
        bound = 1.0 / jnp.sqrt(fan_in)
        w = jax.random.uniform(kw, (fan_in, fan_out), jnp.float32, -bound, bound)
        b = jax.random.uniform(kb, (1, fan_out), jnp.float32, -bound, bound)
        return w, b

    k1, k2, k3, k4 = jax.random.split(key, 4)
    w1, b1 = linear(k1, OBS_DIM, HIDDEN)
    w2, b2 = linear(k2, HIDDEN, HIDDEN)
    wmu, bmu = linear(k3, HIDDEN, ACT_DIM)
    wsig, bsig = linear(k4, HIDDEN, ACT_DIM)
    return (w1, b1, w2, b2, wmu, bmu, wsig, bsig)


def reference_forward(obs, params):
    """Plain-JAX reference of the same forward for a sanity check."""
    (w1, b1, w2, b2, wmu, bmu, wsig, bsig) = params
    obs = obs.astype(jnp.float32)
    h = jnp.maximum(obs @ w1 + b1, 0.0)
    h = jnp.maximum(h @ w2 + b2, 0.0)
    mu = MAX_MU * jnp.tanh(h @ wmu + bmu)
    sigma = jnp.exp(jnp.clip(h @ wsig + bsig, SIGMA_MIN, SIGMA_MAX))
    return mu, sigma


if __name__ == "__main__":
    key = jax.random.PRNGKey(0)
    k_obs, k_params = jax.random.split(key)

    obs = jax.random.normal(k_obs, (BATCH, OBS_DIM), jnp.float32)
    params = init_params(k_params)

    fwd = jax.jit(actor_prob_forward)

    mu, sigma = fwd(obs, params)
    jax.block_until_ready((mu, sigma))

    mu_ref, sigma_ref = reference_forward(obs, params)
    assert mu.shape == (BATCH, ACT_DIM) and sigma.shape == (BATCH, ACT_DIM)
    assert jnp.allclose(mu, mu_ref, atol=1e-5), "mu mismatch vs reference"
    assert jnp.allclose(sigma, sigma_ref, atol=1e-5), "sigma mismatch vs reference"
    assert bool(jnp.all(sigma > 0.0)), "sigma must be positive"

    # Batch that needs lane padding (single grid step).
    obs_pad = jax.random.normal(k_obs, (37, OBS_DIM), jnp.float32)
    mu_p, sig_p = fwd(obs_pad, params)
    jax.block_until_ready((mu_p, sig_p))
    mu_pr, sig_pr = reference_forward(obs_pad, params)
    assert jnp.allclose(mu_p, mu_pr, atol=1e-5), "mu mismatch (padded batch)"
    assert jnp.allclose(sig_p, sig_pr, atol=1e-5), "sigma mismatch (padded batch)"

    # Batch large enough to exercise multiple grid steps (grid_m >= 2).
    obs_big = jax.random.normal(k_obs, (1000, OBS_DIM), jnp.float32)
    mu_b, sig_b = fwd(obs_big, params)
    jax.block_until_ready((mu_b, sig_b))
    mu_br, sig_br = reference_forward(obs_big, params)
    assert jnp.allclose(mu_b, mu_br, atol=1e-5), "mu mismatch (multi-step grid)"
    assert jnp.allclose(sig_b, sig_br, atol=1e-5), "sigma mismatch (multi-step grid)"

    print("KERNEL_OK")
</pallas_src>

<mosaic_0001>
module attributes {stable_mosaic.version = 11 : i64} {
  func.func @actor_prob_kernel(%arg0: i32, %arg1: memref<16x128xf32, #tpu.memory_space<vmem>>, %arg2: memref<32x16xf32, #tpu.memory_space<vmem>>, %arg3: memref<32x32xf32, #tpu.memory_space<vmem>>, %arg4: memref<8x32xf32, #tpu.memory_space<vmem>>, %arg5: memref<72x1xf32, #tpu.memory_space<vmem>>, %arg6: memref<8x128xf32, #tpu.memory_space<vmem>>) attributes {dimension_semantics = [#tpu.dimension_semantics<parallel>], iteration_bounds = array<i64: 1>, scalar_prefetch = 0 : i64, scratch_operands = 0 : i64, tpu.core_type = #tpu.core_type<tc>, window_params = [{transform_indices = @transform_0, window_bounds = array<i64: 16, 128>}, {pipeline_mode = #tpu.pipeline_mode<synchronous>, transform_indices = @transform_1, window_bounds = array<i64: 32, 16>}, {pipeline_mode = #tpu.pipeline_mode<synchronous>, transform_indices = @transform_2, window_bounds = array<i64: 32, 32>}, {pipeline_mode = #tpu.pipeline_mode<synchronous>, transform_indices = @transform_3, window_bounds = array<i64: 8, 32>}, {pipeline_mode = #tpu.pipeline_mode<synchronous>, transform_indices = @transform_4, window_bounds = array<i64: 72, 1>}, {transform_indices = @transform_5, window_bounds = array<i64: 8, 128>}]} {
    %c0 = arith.constant 0 : index
    %c0_0 = arith.constant 0 : index
    %0 = vector.load %arg1[%c0, %c0_0] : memref<16x128xf32, #tpu.memory_space<vmem>>, vector<16x128xf32>
    %c0_1 = arith.constant 0 : index
    %c0_2 = arith.constant 0 : index
    %1 = vector.load %arg5[%c0_1, %c0_2] : memref<72x1xf32, #tpu.memory_space<vmem>>, vector<32x1xf32>
    %c32 = arith.constant 32 : index
    %c0_3 = arith.constant 0 : index
    %2 = vector.load %arg5[%c32, %c0_3] : memref<72x1xf32, #tpu.memory_space<vmem>>, vector<32x1xf32>
    %c64 = arith.constant 64 : index
    %c0_4 = arith.constant 0 : index
    %3 = vector.load %arg5[%c64, %c0_4] : memref<72x1xf32, #tpu.memory_space<vmem>>, vector<8x1xf32>
    %c0_5 = arith.constant 0 : index
    %c0_6 = arith.constant 0 : index
    %4 = vector.load %arg2[%c0_5, %c0_6] : memref<32x16xf32, #tpu.memory_space<vmem>>, vector<32x16xf32>
    %cst = arith.constant dense<0.000000e+00> : vector<32x128xf32>
    %5 = tpu.matmul %4, %0, %cst {dimension_numbers = #tpu.dot_dimension_numbers<[1], [0], [0], [1], [0, 0, 1, 1], [], []>} : vector<32x16xf32>, vector<16x128xf32>, vector<32x128xf32> -> vector<32x128xf32>
    %6 = vector.broadcast %1 : vector<32x1xf32> to vector<32x128xf32>
    %7 = arith.addf %5, %6 : vector<32x128xf32>
    %cst_7 = arith.constant 0.000000e+00 : f32
    %8 = vector.broadcast %cst_7 : f32 to vector<32x128xf32>
    %9 = arith.maximumf %7, %8 : vector<32x128xf32>
    %c0_8 = arith.constant 0 : index
    %c0_9 = arith.constant 0 : index
    %10 = vector.load %arg3[%c0_8, %c0_9] : memref<32x32xf32, #tpu.memory_space<vmem>>, vector<32x32xf32>
    %cst_10 = arith.constant dense<0.000000e+00> : vector<32x128xf32>
    %11 = tpu.matmul %10, %9, %cst_10 {dimension_numbers = #tpu.dot_dimension_numbers<[1], [0], [0], [1], [0, 0, 1, 1], [], []>} : vector<32x32xf32>, vector<32x128xf32>, vector<32x128xf32> -> vector<32x128xf32>
    %12 = vector.broadcast %2 : vector<32x1xf32> to vector<32x128xf32>
    %13 = arith.addf %11, %12 : vector<32x128xf32>
    %cst_11 = arith.constant 0.000000e+00 : f32
    %14 = vector.broadcast %cst_11 : f32 to vector<32x128xf32>
    %15 = arith.maximumf %13, %14 : vector<32x128xf32>
    %c0_12 = arith.constant 0 : index
    %c0_13 = arith.constant 0 : index
    %16 = vector.load %arg4[%c0_12, %c0_13] : memref<8x32xf32, #tpu.memory_space<vmem>>, vector<8x32xf32>
    %cst_14 = arith.constant dense<0.000000e+00> : vector<8x128xf32>
    %17 = tpu.matmul %16, %15, %cst_14 {dimension_numbers = #tpu.dot_dimension_numbers<[1], [0], [0], [1], [0, 0, 1, 1], [], []>} : vector<8x32xf32>, vector<32x128xf32>, vector<8x128xf32> -> vector<8x128xf32>
    %18 = vector.broadcast %3 : vector<8x1xf32> to vector<8x128xf32>
    %19 = arith.addf %17, %18 : vector<8x128xf32>
    %20 = math.tanh %19 : vector<8x128xf32>
    %cst_15 = arith.constant 1.000000e+00 : f32
    %21 = vector.broadcast %cst_15 : f32 to vector<8x128xf32>
    %22 = arith.mulf %21, %20 : vector<8x128xf32>
    %cst_16 = arith.constant -5.000000e+00 : f32
    %cst_17 = arith.constant 2.000000e+00 : f32
    %23 = vector.broadcast %cst_16 : f32 to vector<8x128xf32>
    %24 = arith.maximumf %23, %19 : vector<8x128xf32>
    %25 = vector.broadcast %cst_17 : f32 to vector<8x128xf32>
    %26 = arith.minimumf %25, %24 : vector<8x128xf32>
    %27 = math.exp %26 : vector<8x128xf32>
    %28 = tpu.iota {dimensions = array<i32: 0>} : vector<8x128xi32>
    %c4_i32 = arith.constant 4 : i32
    %29 = vector.broadcast %c4_i32 : i32 to vector<8x128xi32>
    %30 = arith.cmpi slt, %28, %29 : vector<8x128xi32>
    %31 = arith.select %30, %22, %27 : vector<8x128xi1>, vector<8x128xf32>
    %c0_18 = arith.constant 0 : index
    %c0_19 = arith.constant 0 : index
    %32 = vector.load %arg6[%c0_18, %c0_19] : memref<8x128xf32, #tpu.memory_space<vmem>>, vector<8x128xf32>
    tpu.vector_store %arg6[%c0_18, %c0_19], %31 {strides = array<i32>} : memref<8x128xf32, #tpu.memory_space<vmem>>, vector<8x128xf32>,
    return
  }
  func.func @transform_0(%arg0: i32) -> (i32, i32) {
    %c0_i32 = arith.constant 0 : i32
    %c0_i32_0 = arith.constant 0 : i32
    return %c0_i32, %arg0 : i32, i32
  }
  func.func @transform_1(%arg0: i32) -> (i32, i32) {
    %c0_i32 = arith.constant 0 : i32
    %c0_i32_0 = arith.constant 0 : i32
    %c0_i32_1 = arith.constant 0 : i32
    return %c0_i32, %c0_i32_0 : i32, i32
  }
  func.func @transform_2(%arg0: i32) -> (i32, i32) {
    %c0_i32 = arith.constant 0 : i32
    %c0_i32_0 = arith.constant 0 : i32
    %c0_i32_1 = arith.constant 0 : i32
    return %c0_i32, %c0_i32_0 : i32, i32
  }
  func.func @transform_3(%arg0: i32) -> (i32, i32) {
    %c0_i32 = arith.constant 0 : i32
    %c0_i32_0 = arith.constant 0 : i32
    %c0_i32_1 = arith.constant 0 : i32
    return %c0_i32, %c0_i32_0 : i32, i32
  }
  func.func @transform_4(%arg0: i32) -> (i32, i32) {
    %c0_i32 = arith.constant 0 : i32
    %c0_i32_0 = arith.constant 0 : i32
    %c0_i32_1 = arith.constant 0 : i32
    return %c0_i32, %c0_i32_0 : i32, i32
  }
  func.func @transform_5(%arg0: i32) -> (i32, i32) {
    %c0_i32 = arith.constant 0 : i32
    %c0_i32_0 = arith.constant 0 : i32
    return %c0_i32, %arg0 : i32, i32
  }
}

</mosaic_0001>

<bundles_post_ra>
// kernel: actor_prob_forward.1
= control target key start
LH: loop header
LB: loop body
LE: loop exit
PB: predicated region body
PF: predicated region fallthrough
CT: control target
= control target key end

     0   :  { %vm55_vm0 = vcmask 130048   ;;  %v448_v3 = vmov 0   ;;  %vm181_vm1 = vcmask 261120   ;;  %v449_v36 = vmov 0.0   ;;  %s553_s0 = inlined_call_operand.vmem [shape: f32[16,128], index: 0, kind: input, shape index: {}]   ;;  %s554_s1 = inlined_call_operand.vmem [shape: f32[32,16], index: 1, kind: input, shape index: {}]   ;;  %s555_s4 = inlined_call_operand.vmem [shape: f32[72,1], index: 4, kind: input, shape index: {}]   ;;  %s556_s2 = inlined_call_operand.vmem [shape: f32[32,32], index: 2, kind: input, shape index: {}]   ;;  %s557_s3 = inlined_call_operand.vmem [shape: f32[8,32], index: 3, kind: input, shape index: {}]   ;;  %s558_s5 = inlined_call_operand.vmem [shape: f32[8,128], index: 5, kind: output, shape index: {}]  }
   0x1   :  { %v21_v0 = vld [vmem:[%s553_s0 + $0x8] sm:$0xff]  ;;  %v20_v1 = vld [vmem:[%s553_s0] sm:$0xff]  ;;  %442 = vset.pattern.permute.xlu0 %v448_v3  ;;  %443 = vset.pattern.permute.xlu1 %v448_v3  ;;  %v25_v5 = vld [vmem:[%s555_s4 + $0x18] sm:$0xff]  ;;  %vm450_vm2 = vmmov 0   ;;  %v367_v61 = vlaneseq }
   0x2   :  { %v31_v2 = vld [vmem:[%s554_s1] sm:$0xff]  ;;  %404 = vmatprep.subr.mxu0 %v21_v0  ;;  %v32_v4 = vld [vmem:[%s554_s1 + $0x8] sm:$0xff]  ;;  %v33_v6 = vld [vmem:[%s554_s1 + $0x10] sm:$0xff]  ;;  %52 = vperm.xlu0 %442, %v25_v5  }
   0x3   :  { %408 = vmatprep.mubr.msk.f32.mxu0 %vm55_vm0, %v31_v2  ;;  %405 = vmatpush3.msra.mxu0 %v21_v0  ;;  %v23_v7 = vld [vmem:[%s555_s4 + $0x8] sm:$0xff]  ;;  %v24_v8 = vld [vmem:[%s555_s4 + $0x10] sm:$0xff]  ;;  %v22_v9 = vld [vmem:[%s555_s4] sm:$0xff]  ;;  %v368_v62 = vshrl.u32 %v367_v61, 7 }
   0x4   :  { %406 = vmatprep.subr.mxu0 %v20_v1  ;;  %42 = vperm.xlu1 %443, %v23_v7   ;;  %v34_v10 = vld [vmem:[%s554_s1 + $0x18] sm:$0xff]  ;;  %v28_v12 = vld [vmem:[%s555_s4 + $0x30] sm:$0xff]  ;;  %v27_v13 = vld [vmem:[%s555_s4 + $0x28] sm:$0xff] }
   0x5   :  { %407 = vmatpush3.msra.mxu0 %v20_v1  ;;  %v29_v11 = vld [vmem:[%s555_s4 + $0x38] sm:$0xff]  ;;  %v26_v14 = vld [vmem:[%s555_s4 + $0x20] sm:$0xff]  ;;  %v158_v33 = vld [vmem:[%s556_s2 + $0x8] sm:$0xff]  ;;  %vm369_vm3 = vcmp.lt.s32.totalorder %v368_v62, 4 }
   0x6   :  { %409 = vmatmul.mubr.msk.f32.vlgmr.msra.gmra.mxu0 %vm55_vm0, %v32_v4  ;;  %47 = vperm.xlu0 %442, %v24_v8   ;;  %v30_v15 = vld [vmem:[%s555_s4 + $0x40] sm:$0xff]  ;;  %v159_v34 = vld [vmem:[%s556_s2 + $0x10] sm:$0xff]  ;;  %v160_v35 = vld [vmem:[%s556_s2 + $0x18] sm:$0xff] }
   0x7   :  { %411 = vmatprep.mubr.msk.f32.mxu0 %vm55_vm0, %v33_v6  ;;  %v157_v16 = vld [vmem:[%s556_s2] sm:$0xff]  ;;  %428 = vmatprep.subr.mxu0 %v449_v36 }
   0x8   :  { %37 = vperm.xlu1 %443, %v22_v9   ;;  %422 = vmatprep.mubr.msk.f32.mxu1 %vm181_vm1, %v157_v16  ;;  %v283_v53 = vld [vmem:[%s557_s3] sm:$0xff] }
   0xa   :  { %412 = vmatmul.mubr.msk.f32.gmra.mxu0 %vm55_vm0, %v34_v10  ;;  %178 = vperm.xlu0 %442, %v29_v11  }
   0xb   :  { %436 = vmatprep.mubr.msk.f32.mxu0 %vm450_vm2, %v449_v36 }
   0xc   :  { %173 = vperm.xlu1 %443, %v28_v12  }
   0xe   :  { %168 = vperm.xlu0 %442, %v27_v13  }
  0x10   :  { %163 = vperm.xlu1 %443, %v26_v14  }
  0x12   :  { %286 = vperm.xlu0 %442, %v30_v15  }
  0x7d   :  { %v53_v17 = vpop.permute.xlu0 %52 }
  0x7f   :  { %v43_v19 = vpop.permute.xlu1 %42 }
  0x81   :  { %v48_v23 = vpop.permute.xlu0 %47 }
  0x83   :  { %v38_v28 = vpop.permute.xlu1 %37 }
  0x85   :  { %v179_v37 = vpop.permute.xlu0 %178 }
  0x87   :  { %v174_v39 = vpop.permute.xlu1 %173 }
  0x89   :  { %v169_v43 = vpop.permute.xlu0 %168 }
  0x8b   :  { %v164_v48 = vpop.permute.xlu1 %163 }
  0x8d   :  { %v287_v54 = vpop.permute.xlu0 %286 }
  0xc6   :  { %v410_v18 = vpop.f32.mrf.mxu0 }
  0xc7   :  { %v140_v25 = vadd.f32 %v410_v18, %v43_v19 }
  0xc8   :  { %v134_v20 = vpop.f32.mrf.mxu0 }
  0xc9   :  { %v135_v29 = vadd.f32 %v134_v20, %v38_v28  ;;  %v154_v31 = vmax.f32 %v140_v25, 0.0 }
  0xca   :  { %v413_v21 = vpop.f32.mrf.mxu0 }
  0xcb   :  { %v150_v22 = vadd.f32 %v413_v21, %v53_v17  ;;  %v153_v32 = vmax.f32 %v135_v29, 0.0 }
  0xcc   :  { %v144_v24 = vpop.f32.mrf.mxu0 }
  0xcd   :  { %v156_v26 = vmax.f32 %v150_v22, 0.0  ;;  %v145_v27 = vadd.f32 %v144_v24, %v48_v23 }
  0xcf   :  { %v155_v30 = vmax.f32 %v145_v27, 0.0  ;;  %414 = vmatprep.subr.mxu1 %v156_v26 }
  0xd0   :  { %415 = vmatpush3.msra.mxu1 %v156_v26 }
  0xd1   :  { %416 = vmatprep.subr.mxu1 %v155_v30 }
  0xd2   :  { %417 = vmatpush3.msra.mxu1 %v155_v30 }
  0xd3   :  { %418 = vmatprep.subr.mxu1 %v154_v31 }
  0xd4   :  { %419 = vmatpush3.msra.mxu1 %v154_v31 }
  0xd5   :  { %420 = vmatprep.subr.mxu1 %v153_v32 }
  0xd6   :  { %421 = vmatpush3.msra.mxu1 %v153_v32 }
  0xd7   :  { %423 = vmatmul.mubr.msk.f32.vlgmr.msra.gmra.mxu1 %vm181_vm1, %v158_v33 }
  0xd8   :  { %425 = vmatprep.mubr.msk.f32.mxu1 %vm181_vm1, %v159_v34 }
  0xdb   :  { %426 = vmatmul.mubr.msk.f32.gmra.mxu1 %vm181_vm1, %v160_v35 }
 0x197   :  { %v424_v38 = vpop.f32.mrf.mxu1 }
 0x198   :  { %v266_v45 = vadd.f32 %v424_v38, %v169_v43 }
 0x199   :  { %v260_v40 = vpop.f32.mrf.mxu1 }
 0x19a   :  { %v261_v49 = vadd.f32 %v260_v40, %v164_v48  ;;  %v280_v51 = vmax.f32 %v266_v45, 0.0 }
 0x19b   :  { %v427_v41 = vpop.f32.mrf.mxu1 }
 0x19c   :  { %v276_v42 = vadd.f32 %v427_v41, %v179_v37  ;;  %v279_v52 = vmax.f32 %v261_v49, 0.0 }
 0x19d   :  { %v270_v44 = vpop.f32.mrf.mxu1 }
 0x19e   :  { %v282_v46 = vmax.f32 %v276_v42, 0.0  ;;  %v271_v47 = vadd.f32 %v270_v44, %v174_v39 }
 0x1a0   :  { %v281_v50 = vmax.f32 %v271_v47, 0.0  ;;  %429 = vmatpush3.msra.mxu0 %v282_v46 }
 0x1a1   :  { %430 = vmatprep.subr.mxu0 %v449_v36 }
 0x1a2   :  { %431 = vmatpush3.msra.mxu0 %v281_v50 }
 0x1a3   :  { %432 = vmatprep.subr.mxu0 %v449_v36 }
 0x1a4   :  { %433 = vmatpush3.msra.mxu0 %v280_v51 }
 0x1a5   :  { %434 = vmatprep.subr.mxu0 %v449_v36 }
 0x1a6   :  { %435 = vmatpush3.msra.mxu0 %v279_v52 }
 0x1a7   :  { %437 = vmatmul.mubr.msk.f32.vlgmr.msra.gmra.mxu0 %vm181_vm1, %v283_v53 }
 0x267   :  { %v358_v55 = vpop.f32.mrf.mxu0 }
 0x268   :  { %v359_v56 = vadd.f32 %v358_v55, %v287_v54 }
 0x269   :  { %v438_v57 = vpop.f32.mrf.mxu0 }
 0x26a   :  { %v363_v58 = vmax.f32 %v359_v56, -5.0  ;;  %444 = vtanh.f32 %v359_v56 }
 0x26c   :  { %v364_v59 = vmin.f32 %v363_v58, 2.0 }
 0x26e   :  { %v365_v60 = vmul.f32 1.442695, %v364_v59 }
 0x270   :  { %446 = vpow2.f32 %v365_v60 }
 0x277   :  { %v445_v63 = vpop.eup %444 }
 0x27d   :  { %v447_v0 = vpop.eup %446 }
 0x27e   :  { %v370_v1 = vsel %vm369_vm3, %v445_v63, %v447_v0 }
 0x27f   :  { %371 = vst [vmem:[%s558_s5] sm:$0xff] %v370_v1 }

</bundles_post_ra>
